<compile_context>
chip_gen: v6e
topology: v6e:2x2x1
jax: 0.10.0
libtpu: 0.0.40
codegen_flags: <defaults>
</compile_context>

<pallas_src>
import jax
import jax.numpy as jnp
from jax import lax
from jax.experimental import pallas as pl
from jax.experimental.pallas import tpu as pltpu


EPS = 1e-5  # PyTorch InstanceNorm2d default


def _deconv_instnorm_kernel(p_ref, w_ref, g_ref, b_ref, o_ref):
    """Per-image fused (sub-pixel ConvTranspose2d matmuls + InstanceNorm2d).

    p_ref: (1, P, TTC, OHWp)  patches for one image, P = stride^2 phases
    w_ref: (P, Cout, TTC)     per-phase weight matrices (pre-transposed)
    g_ref: (Cout, 1)          instance-norm gamma
    b_ref: (Cout, 1)          instance-norm beta
    o_ref: (1, P, Cout, OHWp) per-phase normalized output (OHWp lane-dense)
    """
    num_phases = w_ref.shape[0]
    ohwp = p_ref.shape[-1]

    # One MXU matmul per phase, f32 accumulation, lane-dense (Cout, OHWp).
    ys = []
    for p in range(num_phases):                       # static unroll, P = s*s
        ys.append(jnp.dot(w_ref[p], p_ref[0, p],
                          preferred_element_type=jnp.float32))

    # Instance-norm stats per channel over ALL phases/spatial positions
    # (two-pass: mean, then centered sum of squares -> no cancellation).
    inv_n = 1.0 / float(num_phases * ohwp)
    tot = ys[0]
    for y in ys[1:]:
        tot = tot + y
    mean = jnp.sum(tot, axis=1, keepdims=True) * inv_n            # (Cout, 1)
    sq = jnp.square(ys[0] - mean)
    for y in ys[1:]:
        sq = sq + jnp.square(y - mean)
    var = jnp.sum(sq, axis=1, keepdims=True) * inv_n              # (Cout, 1)

    # Fused affine: a single FMA pass per phase.  (The ConvTranspose2d bias is
    # a per-channel constant, exactly cancelled by the mean subtraction, so it
    # is never added.)
    scale = g_ref[...] * lax.rsqrt(var + EPS)                     # (Cout, 1)
    shift = b_ref[...] - mean * scale
    for p in range(num_phases):
        o_ref[0, p] = (ys[p] * scale + shift).astype(o_ref.dtype)


def deconv_layer(x, weight, bias, gamma, beta, *, stride, output_padding,
                 matmul_dtype=jnp.bfloat16):
    """ConvTranspose2d(k, stride, padding=k//2, output_padding) + InstanceNorm2d(affine).

    x:      (N, Cin, H, W)      float32, NCHW
    weight: (Cin, Cout, k, k)   PyTorch ConvTranspose2d weight layout
    bias:   (Cout,)             ConvTranspose2d bias (no-op under InstanceNorm)
    gamma:  (Cout,)             InstanceNorm2d scale
    beta:   (Cout,)             InstanceNorm2d shift
    returns (N, Cout, OH, OW)
    """
    del bias  # per-channel constant: exactly cancelled by instance-norm mean
    N, Cin, H, W = x.shape
    _, Cout, k, _ = weight.shape
    pad = k // 2
    s = stride
    OH = (H - 1) * s - 2 * pad + k + output_padding
    OW = (W - 1) * s - 2 * pad + k + output_padding
    # TODO(synk): support OH/OW not divisible by stride (per-phase output
    #   sizes) and large OH*OW (OHW-tiled grid with accumulated two-pass
    #   stats, sized for v7x's 64 MiB VMEM).
    assert OH % s == 0 and OW % s == 0, (OH, OW, s)
    OHp, OWp = OH // s, OW // s
    OHWp = OHp * OWp
    P = s * s                          # number of sub-pixel phases
    T = -(-k // s)                     # ceil(k/s): max taps per spatial dim
    TTC = T * T * Cin                  # per-phase contraction length

    # ---- glue (pure JAX): per-phase stride-1 patches and weight matrices ----
    # ConvTranspose:  y[oh,ow] += x[ih,iw] * W[ci,co,kh,kw]  with
    #   oh = ih*s - pad + kh.  For output phase ph = oh % s the valid taps are
    #   kh = r_h + t*s and the input row is ih = q + D_h - t (q = oh // s),
    #   i.e. a plain stride-1 read of x — no dilated/zero-stuffed input.
    x_p = jnp.pad(x, ((0, 0), (0, 0), (k, k), (k, k)))  # halo covers all taps

    patch_phases = []
    weight_phases = []
    for ph in range(s):
        r_h = (ph + pad) % s
        T_h = 0 if r_h >= k else (k - 1 - r_h) // s + 1
        D_h = (ph + pad) // s
        for pw in range(s):
            r_w = (pw + pad) % s
            T_w = 0 if r_w >= k else (k - 1 - r_w) // s + 1
            D_w = (pw + pad) // s
            taps = []
            w_blk = jnp.zeros((T, T, Cin, Cout), weight.dtype)
            for th in range(T):
                for tw in range(T):
                    if th < T_h and tw < T_w:
                        rs = k + D_h - th
                        cs = k + D_w - tw
                        slab = x_p[:, :, rs:rs + OHp, cs:cs + OWp]
                        taps.append(slab.reshape(N, Cin, OHWp))
                        w_blk = w_blk.at[th, tw].set(
                            weight[:, :, r_h + th * s, r_w + tw * s])
                    else:  # dummy tap (this phase has fewer than T taps)
                        taps.append(jnp.zeros((N, Cin, OHWp), x.dtype))
            patch_phases.append(jnp.stack(taps, axis=1).reshape(N, TTC, OHWp))
            weight_phases.append(
                jnp.transpose(w_blk, (3, 0, 1, 2)).reshape(Cout, TTC))

    patches = jnp.stack(patch_phases, axis=1)           # (N, P, TTC, OHWp)
    w_all = jnp.stack(weight_phases, axis=0)            # (P, Cout, TTC)

    out_ph = pl.pallas_call(
        _deconv_instnorm_kernel,
        out_shape=jax.ShapeDtypeStruct((N, P, Cout, OHWp), jnp.float32),
        grid_spec=pltpu.PrefetchScalarGridSpec(
            num_scalar_prefetch=0,
            grid=(N,),
            in_specs=[
                pl.BlockSpec((1, P, TTC, OHWp), lambda n: (n, 0, 0, 0)),
                pl.BlockSpec((P, Cout, TTC), lambda n: (0, 0, 0)),
                pl.BlockSpec((Cout, 1), lambda n: (0, 0)),
                pl.BlockSpec((Cout, 1), lambda n: (0, 0)),
            ],
            out_specs=pl.BlockSpec((1, P, Cout, OHWp), lambda n: (n, 0, 0, 0)),
        ),
        compiler_params=pltpu.CompilerParams(
            dimension_semantics=("parallel",)),
    )(patches.astype(matmul_dtype), w_all.astype(matmul_dtype),
      gamma.reshape(Cout, 1).astype(jnp.float32),
      beta.reshape(Cout, 1).astype(jnp.float32))

    # (N, P=ph*s+pw, Cout, OHp*OWp) -> NCHW by interleaving the phases.
    out6 = out_ph.reshape(N, s, s, Cout, OHp, OWp)
    return jnp.transpose(out6, (0, 3, 4, 1, 5, 2)).reshape(N, Cout, OH, OW)


def _reference(x, weight, bias, gamma, beta, *, stride, output_padding):
    """Pure-JAX reference via lax.conv_general_dilated (independent path)."""
    Cin, Cout, k, _ = weight.shape
    pad = k // 2
    lo = k - 1 - pad
    hi = k - 1 - pad + output_padding
    w_flip_oihw = jnp.transpose(weight[:, :, ::-1, ::-1], (1, 0, 2, 3))  # (Cout,Cin,k,k)
    y = lax.conv_general_dilated(
        x, w_flip_oihw,
        window_strides=(1, 1),
        padding=((lo, hi), (lo, hi)),
        lhs_dilation=(stride, stride),
        dimension_numbers=('NCHW', 'OIHW', 'NCHW'))
    y = y + bias.reshape(1, -1, 1, 1)
    mean = jnp.mean(y, axis=(2, 3), keepdims=True)
    var = jnp.mean((y - mean) ** 2, axis=(2, 3), keepdims=True)
    y_hat = (y - mean) * lax.rsqrt(var + EPS)
    return y_hat * gamma.reshape(1, -1, 1, 1) + beta.reshape(1, -1, 1, 1)


if __name__ == "__main__":
    # DeconvLayer(in_channels=4, out_channels=8, kernel_size=3, stride=2,
    #             output_padding=1, norm='instance')
    N, Cin, H, W = 2, 4, 16, 16
    Cout, k, stride, out_pad = 8, 3, 2, 1

    key = jax.random.PRNGKey(0)
    kx, kw, kb, kg, kbe = jax.random.split(key, 5)
    x = jax.random.normal(kx, (N, Cin, H, W), jnp.float32)
    weight = 0.1 * jax.random.normal(kw, (Cin, Cout, k, k), jnp.float32)
    bias = 0.1 * jax.random.normal(kb, (Cout,), jnp.float32)
    gamma = 1.0 + 0.1 * jax.random.normal(kg, (Cout,), jnp.float32)
    beta = 0.1 * jax.random.normal(kbe, (Cout,), jnp.float32)

    ref = _reference(x, weight, bias, gamma, beta,
                     stride=stride, output_padding=out_pad)

    # f32-operand path: validates the sub-pixel decomposition tightly.
    out_f32 = deconv_layer(x, weight, bias, gamma, beta,
                           stride=stride, output_padding=out_pad,
                           matmul_dtype=jnp.float32)
    out_f32 = jax.block_until_ready(out_f32)
    assert out_f32.shape == (N, Cout, 32, 32), out_f32.shape
    assert jnp.allclose(out_f32, ref, atol=1e-4, rtol=1e-4), \
        float(jnp.max(jnp.abs(out_f32 - ref)))

    # bf16-operand path (default, MXU-native); stats/accumulation stay fp32,
    # so only operand rounding differs -> looser tolerance vs f32 reference.
    out = deconv_layer(x, weight, bias, gamma, beta,
                       stride=stride, output_padding=out_pad)
    out = jax.block_until_ready(out)
    assert out.shape == (N, Cout, 32, 32), out.shape
    assert jnp.allclose(out, ref, atol=3e-2, rtol=0.0), \
        float(jnp.max(jnp.abs(out - ref)))

    print("KERNEL_OK")
</pallas_src>

<mosaic_0001>
module attributes {stable_mosaic.version = 11 : i64} {
  func.func @_deconv_instnorm_kernel(%arg0: i32, %arg1: memref<1x4x16x256xf32, #tpu.memory_space<vmem>>, %arg2: memref<4x8x16xf32, #tpu.memory_space<vmem>>, %arg3: memref<8x1xf32, #tpu.memory_space<vmem>>, %arg4: memref<8x1xf32, #tpu.memory_space<vmem>>, %arg5: memref<1x4x8x256xf32, #tpu.memory_space<vmem>>) attributes {dimension_semantics = [#tpu.dimension_semantics<parallel>], iteration_bounds = array<i64: 2>, scalar_prefetch = 0 : i64, scratch_operands = 0 : i64, tpu.core_type = #tpu.core_type<tc>, window_params = [{transform_indices = @transform_0, window_bounds = array<i64: 1, 4, 16, 256>}, {pipeline_mode = #tpu.pipeline_mode<synchronous>, transform_indices = @transform_1, window_bounds = array<i64: 4, 8, 16>}, {pipeline_mode = #tpu.pipeline_mode<synchronous>, transform_indices = @transform_2, window_bounds = array<i64: 8, 1>}, {pipeline_mode = #tpu.pipeline_mode<synchronous>, transform_indices = @transform_3, window_bounds = array<i64: 8, 1>}, {transform_indices = @transform_4, window_bounds = array<i64: 1, 4, 8, 256>}]} {
    %c0 = arith.constant 0 : index
    %c0_0 = arith.constant 0 : index
    %c0_1 = arith.constant 0 : index
    %0 = vector.load %arg2[%c0, %c0_0, %c0_1] : memref<4x8x16xf32, #tpu.memory_space<vmem>>, vector<1x8x16xf32>
    %1 = vector.shape_cast %0 : vector<1x8x16xf32> to vector<8x16xf32>
    %c0_2 = arith.constant 0 : index
    %c0_3 = arith.constant 0 : index
    %c0_4 = arith.constant 0 : index
    %c0_5 = arith.constant 0 : index
    %2 = vector.load %arg1[%c0_2, %c0_3, %c0_4, %c0_5] : memref<1x4x16x256xf32, #tpu.memory_space<vmem>>, vector<1x1x16x256xf32>
    %3 = vector.shape_cast %2 : vector<1x1x16x256xf32> to vector<16x256xf32>
    %cst = arith.constant dense<0.000000e+00> : vector<8x256xf32>
    %4 = tpu.matmul %1, %3, %cst {dimension_numbers = #tpu.dot_dimension_numbers<[1], [0], [0], [1], [0, 0, 1, 1], [], []>} : vector<8x16xf32>, vector<16x256xf32>, vector<8x256xf32> -> vector<8x256xf32>
    %c1 = arith.constant 1 : index
    %c0_6 = arith.constant 0 : index
    %c0_7 = arith.constant 0 : index
    %5 = vector.load %arg2[%c1, %c0_6, %c0_7] : memref<4x8x16xf32, #tpu.memory_space<vmem>>, vector<1x8x16xf32>
    %6 = vector.shape_cast %5 : vector<1x8x16xf32> to vector<8x16xf32>
    %c0_8 = arith.constant 0 : index
    %c1_9 = arith.constant 1 : index
    %c0_10 = arith.constant 0 : index
    %c0_11 = arith.constant 0 : index
    %7 = vector.load %arg1[%c0_8, %c1_9, %c0_10, %c0_11] : memref<1x4x16x256xf32, #tpu.memory_space<vmem>>, vector<1x1x16x256xf32>
    %8 = vector.shape_cast %7 : vector<1x1x16x256xf32> to vector<16x256xf32>
    %cst_12 = arith.constant dense<0.000000e+00> : vector<8x256xf32>
    %9 = tpu.matmul %6, %8, %cst_12 {dimension_numbers = #tpu.dot_dimension_numbers<[1], [0], [0], [1], [0, 0, 1, 1], [], []>} : vector<8x16xf32>, vector<16x256xf32>, vector<8x256xf32> -> vector<8x256xf32>
    %c2 = arith.constant 2 : index
    %c0_13 = arith.constant 0 : index
    %c0_14 = arith.constant 0 : index
    %10 = vector.load %arg2[%c2, %c0_13, %c0_14] : memref<4x8x16xf32, #tpu.memory_space<vmem>>, vector<1x8x16xf32>
    %11 = vector.shape_cast %10 : vector<1x8x16xf32> to vector<8x16xf32>
    %c0_15 = arith.constant 0 : index
    %c2_16 = arith.constant 2 : index
    %c0_17 = arith.constant 0 : index
    %c0_18 = arith.constant 0 : index
    %12 = vector.load %arg1[%c0_15, %c2_16, %c0_17, %c0_18] : memref<1x4x16x256xf32, #tpu.memory_space<vmem>>, vector<1x1x16x256xf32>
    %13 = vector.shape_cast %12 : vector<1x1x16x256xf32> to vector<16x256xf32>
    %cst_19 = arith.constant dense<0.000000e+00> : vector<8x256xf32>
    %14 = tpu.matmul %11, %13, %cst_19 {dimension_numbers = #tpu.dot_dimension_numbers<[1], [0], [0], [1], [0, 0, 1, 1], [], []>} : vector<8x16xf32>, vector<16x256xf32>, vector<8x256xf32> -> vector<8x256xf32>
    %c3 = arith.constant 3 : index
    %c0_20 = arith.constant 0 : index
    %c0_21 = arith.constant 0 : index
    %15 = vector.load %arg2[%c3, %c0_20, %c0_21] : memref<4x8x16xf32, #tpu.memory_space<vmem>>, vector<1x8x16xf32>
    %16 = vector.shape_cast %15 : vector<1x8x16xf32> to vector<8x16xf32>
    %c0_22 = arith.constant 0 : index
    %c3_23 = arith.constant 3 : index
    %c0_24 = arith.constant 0 : index
    %c0_25 = arith.constant 0 : index
    %17 = vector.load %arg1[%c0_22, %c3_23, %c0_24, %c0_25] : memref<1x4x16x256xf32, #tpu.memory_space<vmem>>, vector<1x1x16x256xf32>
    %18 = vector.shape_cast %17 : vector<1x1x16x256xf32> to vector<16x256xf32>
    %cst_26 = arith.constant dense<0.000000e+00> : vector<8x256xf32>
    %19 = tpu.matmul %16, %18, %cst_26 {dimension_numbers = #tpu.dot_dimension_numbers<[1], [0], [0], [1], [0, 0, 1, 1], [], []>} : vector<8x16xf32>, vector<16x256xf32>, vector<8x256xf32> -> vector<8x256xf32>
    %20 = arith.addf %4, %9 : vector<8x256xf32>
    %21 = arith.addf %20, %14 : vector<8x256xf32>
    %22 = arith.addf %21, %19 : vector<8x256xf32>
    %cst_27 = arith.constant dense<0.000000e+00> : vector<8xf32>
    %23 = vector.multi_reduction <add>, %22, %cst_27 [1] : vector<8x256xf32> to vector<8xf32>
    %24 = vector.shape_cast %23 : vector<8xf32> to vector<8x1xf32>
    %cst_28 = arith.constant 9.765625E-4 : f32
    %25 = vector.broadcast %cst_28 : f32 to vector<8x1xf32>
    %26 = arith.mulf %24, %25 : vector<8x1xf32>
    %27 = vector.broadcast %26 : vector<8x1xf32> to vector<8x256xf32>
    %28 = arith.subf %4, %27 : vector<8x256xf32>
    %29 = arith.mulf %28, %28 : vector<8x256xf32>
    %30 = vector.broadcast %26 : vector<8x1xf32> to vector<8x256xf32>
    %31 = arith.subf %9, %30 : vector<8x256xf32>
    %32 = arith.mulf %31, %31 : vector<8x256xf32>
    %33 = arith.addf %29, %32 : vector<8x256xf32>
    %34 = vector.broadcast %26 : vector<8x1xf32> to vector<8x256xf32>
    %35 = arith.subf %14, %34 : vector<8x256xf32>
    %36 = arith.mulf %35, %35 : vector<8x256xf32>
    %37 = arith.addf %33, %36 : vector<8x256xf32>
    %38 = vector.broadcast %26 : vector<8x1xf32> to vector<8x256xf32>
    %39 = arith.subf %19, %38 : vector<8x256xf32>
    %40 = arith.mulf %39, %39 : vector<8x256xf32>
    %41 = arith.addf %37, %40 : vector<8x256xf32>
    %cst_29 = arith.constant dense<0.000000e+00> : vector<8xf32>
    %42 = vector.multi_reduction <add>, %41, %cst_29 [1] : vector<8x256xf32> to vector<8xf32>
    %43 = vector.shape_cast %42 : vector<8xf32> to vector<8x1xf32>
    %cst_30 = arith.constant 9.765625E-4 : f32
    %44 = vector.broadcast %cst_30 : f32 to vector<8x1xf32>
    %45 = arith.mulf %43, %44 : vector<8x1xf32>
    %c0_31 = arith.constant 0 : index
    %c0_32 = arith.constant 0 : index
    %46 = vector.load %arg3[%c0_31, %c0_32] : memref<8x1xf32, #tpu.memory_space<vmem>>, vector<8x1xf32>
    %cst_33 = arith.constant 9.99999974E-6 : f32
    %47 = vector.broadcast %cst_33 : f32 to vector<8x1xf32>
    %48 = arith.addf %45, %47 : vector<8x1xf32>
    %49 = math.rsqrt %48 : vector<8x1xf32>
    %50 = arith.mulf %46, %49 : vector<8x1xf32>
    %c0_34 = arith.constant 0 : index
    %c0_35 = arith.constant 0 : index
    %51 = vector.load %arg4[%c0_34, %c0_35] : memref<8x1xf32, #tpu.memory_space<vmem>>, vector<8x1xf32>
    %52 = arith.mulf %26, %50 : vector<8x1xf32>
    %53 = arith.subf %51, %52 : vector<8x1xf32>
    %54 = vector.broadcast %50 : vector<8x1xf32> to vector<8x256xf32>
    %55 = arith.mulf %4, %54 : vector<8x256xf32>
    %56 = vector.broadcast %53 : vector<8x1xf32> to vector<8x256xf32>
    %57 = arith.addf %55, %56 : vector<8x256xf32>
    %c0_36 = arith.constant 0 : index
    %c0_37 = arith.constant 0 : index
    %c0_38 = arith.constant 0 : index
    %c0_39 = arith.constant 0 : index
    %58 = vector.load %arg5[%c0_36, %c0_37, %c0_38, %c0_39] : memref<1x4x8x256xf32, #tpu.memory_space<vmem>>, vector<1x1x8x256xf32>
    %59 = vector.shape_cast %58 : vector<1x1x8x256xf32> to vector<8x256xf32>
    %60 = vector.shape_cast %57 : vector<8x256xf32> to vector<1x1x8x256xf32>
    tpu.vector_store %arg5[%c0_36, %c0_37, %c0_38, %c0_39], %60 {strides = array<i32>} : memref<1x4x8x256xf32, #tpu.memory_space<vmem>>, vector<1x1x8x256xf32>,
    %61 = vector.broadcast %50 : vector<8x1xf32> to vector<8x256xf32>
    %62 = arith.mulf %9, %61 : vector<8x256xf32>
    %63 = vector.broadcast %53 : vector<8x1xf32> to vector<8x256xf32>
    %64 = arith.addf %62, %63 : vector<8x256xf32>
    %c0_40 = arith.constant 0 : index
    %c1_41 = arith.constant 1 : index
    %c0_42 = arith.constant 0 : index
    %c0_43 = arith.constant 0 : index
    %65 = vector.load %arg5[%c0_40, %c1_41, %c0_42, %c0_43] : memref<1x4x8x256xf32, #tpu.memory_space<vmem>>, vector<1x1x8x256xf32>
    %66 = vector.shape_cast %65 : vector<1x1x8x256xf32> to vector<8x256xf32>
    %67 = vector.shape_cast %64 : vector<8x256xf32> to vector<1x1x8x256xf32>
    tpu.vector_store %arg5[%c0_40, %c1_41, %c0_42, %c0_43], %67 {strides = array<i32>} : memref<1x4x8x256xf32, #tpu.memory_space<vmem>>, vector<1x1x8x256xf32>,
    %68 = vector.broadcast %50 : vector<8x1xf32> to vector<8x256xf32>
    %69 = arith.mulf %14, %68 : vector<8x256xf32>
    %70 = vector.broadcast %53 : vector<8x1xf32> to vector<8x256xf32>
    %71 = arith.addf %69, %70 : vector<8x256xf32>
    %c0_44 = arith.constant 0 : index
    %c2_45 = arith.constant 2 : index
    %c0_46 = arith.constant 0 : index
    %c0_47 = arith.constant 0 : index
    %72 = vector.load %arg5[%c0_44, %c2_45, %c0_46, %c0_47] : memref<1x4x8x256xf32, #tpu.memory_space<vmem>>, vector<1x1x8x256xf32>
    %73 = vector.shape_cast %72 : vector<1x1x8x256xf32> to vector<8x256xf32>
    %74 = vector.shape_cast %71 : vector<8x256xf32> to vector<1x1x8x256xf32>
    tpu.vector_store %arg5[%c0_44, %c2_45, %c0_46, %c0_47], %74 {strides = array<i32>} : memref<1x4x8x256xf32, #tpu.memory_space<vmem>>, vector<1x1x8x256xf32>,
    %75 = vector.broadcast %50 : vector<8x1xf32> to vector<8x256xf32>
    %76 = arith.mulf %19, %75 : vector<8x256xf32>
    %77 = vector.broadcast %53 : vector<8x1xf32> to vector<8x256xf32>
    %78 = arith.addf %76, %77 : vector<8x256xf32>
    %c0_48 = arith.constant 0 : index
    %c3_49 = arith.constant 3 : index
    %c0_50 = arith.constant 0 : index
    %c0_51 = arith.constant 0 : index
    %79 = vector.load %arg5[%c0_48, %c3_49, %c0_50, %c0_51] : memref<1x4x8x256xf32, #tpu.memory_space<vmem>>, vector<1x1x8x256xf32>
    %80 = vector.shape_cast %79 : vector<1x1x8x256xf32> to vector<8x256xf32>
    %81 = vector.shape_cast %78 : vector<8x256xf32> to vector<1x1x8x256xf32>
    tpu.vector_store %arg5[%c0_48, %c3_49, %c0_50, %c0_51], %81 {strides = array<i32>} : memref<1x4x8x256xf32, #tpu.memory_space<vmem>>, vector<1x1x8x256xf32>,
    return
  }
  func.func @transform_0(%arg0: i32) -> (i32, i32, i32, i32) {
    %c0_i32 = arith.constant 0 : i32
    %c0_i32_0 = arith.constant 0 : i32
    %c0_i32_1 = arith.constant 0 : i32
    %c0_i32_2 = arith.constant 0 : i32
    return %arg0, %c0_i32, %c0_i32_0, %c0_i32_1 : i32, i32, i32, i32
  }
  func.func @transform_1(%arg0: i32) -> (i32, i32, i32) {
    %c0_i32 = arith.constant 0 : i32
    %c0_i32_0 = arith.constant 0 : i32
    %c0_i32_1 = arith.constant 0 : i32
    %c0_i32_2 = arith.constant 0 : i32
    return %c0_i32, %c0_i32_0, %c0_i32_1 : i32, i32, i32
  }
  func.func @transform_2(%arg0: i32) -> (i32, i32) {
    %c0_i32 = arith.constant 0 : i32
    %c0_i32_0 = arith.constant 0 : i32
    %c0_i32_1 = arith.constant 0 : i32
    return %c0_i32, %c0_i32_0 : i32, i32
  }
  func.func @transform_3(%arg0: i32) -> (i32, i32) {
    %c0_i32 = arith.constant 0 : i32
    %c0_i32_0 = arith.constant 0 : i32
    %c0_i32_1 = arith.constant 0 : i32
    return %c0_i32, %c0_i32_0 : i32, i32
  }
  func.func @transform_4(%arg0: i32) -> (i32, i32, i32, i32) {
    %c0_i32 = arith.constant 0 : i32
    %c0_i32_0 = arith.constant 0 : i32
    %c0_i32_1 = arith.constant 0 : i32
    %c0_i32_2 = arith.constant 0 : i32
    return %arg0, %c0_i32, %c0_i32_0, %c0_i32_1 : i32, i32, i32, i32
  }
}

</mosaic_0001>

<bundles_post_ra>
// kernel: tpu_custom_call.1
= control target key start
LH: loop header
LB: loop body
LE: loop exit
PB: predicated region body
PF: predicated region fallthrough
CT: control target
= control target key end

     0   :  { %9 = vsyncpa [#allocation3], 0  ;;  %s1211_s0 = inlined_call_operand.hbm [shape: f32[2,4,16,256], index: 0, kind: input, shape index: {}]   ;;  %s1212_s1 = inlined_call_operand.hbm [shape: f32[4,8,16], index: 1, kind: input, shape index: {}]   ;;  %s1213_s2 = inlined_call_operand.vmem [shape: f32[8,1], index: 2, kind: input, shape index: {}]   ;;  %s1214_s3 = inlined_call_operand.vmem [shape: f32[8,1], index: 3, kind: input, shape index: {}]   ;;  %s1215_s4 = inlined_call_operand.hbm [shape: f32[2,4,8,256], index: 4, kind: output, shape index: {}]  }
   0x1   :  { %11 = vsyncpa [#allocation3 + $0x1], 0 }
   0x2   :  { %12 = vsyncpa [#allocation6], 0 }
   0x3   :  { %13 = vsyncpa [#allocation4], 0 }
   0x4   :  { %15 = vsyncpa [#allocation4 + $0x1], 0  ;;  %s1000_s15 = smov 0   ;;  %s1002_s16 = smov 0  }
   0x5   :  { %s1004_s17 = smov 0   ;;  %s1006_s18 = smov 0  }
   0x6 LB: > { %s1021_s19 = sadd.s32 4294967295, %s962_s18   ;;  %s731_s20 = sadd.s32 4294967294, %s962_s18   ;;  %s962_s18 = sphi %s1006_s18, %s1237_s18   ;;  %s958_s17 = sphi %s1004_s17, %s1236_s17   ;;  %s954_s16 = sphi %s1002_s16, %s1235_s16   ;;  %s950_s15 = sphi %s1000_s15, %s1234_s15  }
   0x7   : > { %p41_p0 = scmp.ne.s32.totalorder %s954_s16, %s950_s15  ;;  %p1216_p1 = scmp.eq.s32.totalorder %s1021_s19, 0 }
   0x8   : > { %p134_p3 = scmp.eq.s32.totalorder %s731_s20, 1  ;;  %p732_p5 = scmp.ge.s32.totalorder %s962_s18, 1 }
   0x9   : > { %p1030_p4 = por %p1216_p1, %p41_p0  ;;  %p141_p7 = scmp.lt.s32.totalorder %s962_s18, 3 }
   0xa   : > { %p1035_p6 = por %p134_p3, %p41_p0  ;;  %s964_s24 = smov [#allocation5]  }
   0xb   : > { %s1220_s21 = scalar_select %p1030_p4, 1, 0 }
   0xc   : > { %s1221_s22 = scalar_select %p1035_p6, 1, 0 }
   0xd   : > { %p1040_p8 = pnand %p732_p5, %p141_p7  ;;  %s153_s25 = sshll.u32 %s964_s24, 4  ;;  %s154_s25 = int_to_ptr.vmem [resolvable:$true] %s153_s25 }
   0xe   : > { %s1054_s27 = sadd.s32 1, %s962_s18   ;;  %s28_s28 = sadd.s32 1, %s958_s17 }
   0xf   : > { %s1222_s23 = scalar_select %p1040_p8, 1, 0 }
  0x10   : > { %p779_p9 = pneg %p1040_p8  ;;  %s25_s29 = ssub.s32 %s962_s18, %s1054_s27 }
  0x11   : > { %s851_s30 = scalar_lea.vmem %s154_s25, 512  ;;  %p859_p5 = scmp.lt.s32.totalorder %s154_s25, %s154_s25 }
  0x12   : > { %p1049_p11 = pnand %p779_p9, %p1216_p1  ;;  %p852_p13 = scmp.ne.s32.totalorder %s154_s25, %s851_s30 }
  0x13   : > { %p860_p7 = scmp.lt.s32.totalorder %s851_s30, %s851_s30 }
  0x14   : > { %p842_p12 = pneg %p1049_p11 }
  0x15   : > { %p861_p10 = por %p860_p7, %p859_p5 }
  0x16   : > { %p854_p0 = pnand %p852_p13, %p842_p12 }
  0x18   : > { %p855_p3 = pneg %p854_p0 }
  0x1a   : > { %p862_p2 = pnand %p861_p10, %p855_p3 }
  0x1c   : > { %865 = shalt.err (!%p862_p2)
}
  0x1d   : > { %s965_s5 = smov 128   ;;  %s966_s6 = smov 8  }
  0x1e   : > { %782 = dma.hbm_to_vmem [thread:$0]  (!%p1049_p11), %s1212_s1, 512, %s154_s25, [#allocation6], %s965_s5, %s965_s5, %s966_s6  }
  0x1f   : > { %p26_p9 = scmp.eq.s32.totalorder %s25_s29, 0  ;;  %p35_p12 = scmp.ne.s32.totalorder %s958_s17, %s954_s16 }
  0x20   : > { %p36_p10 = scmp.eq.s32.totalorder %s962_s18, 0  ;;  %p792_p2 = scmp.lt.s32.totalorder %s962_s18, 2 }
  0x21   : > { %s1071_s9 = scalar_select %p26_p9, %s958_s17, %s28_s28  }
  0x22   : > { %p37_p13 = por %p36_p10, %p35_p12  ;;  %p1224_p0 = scmp.eq.s32.totalorder %s1021_s19, 1 }
  0x23   : > { %s173_s11 = sand.u32 1, %s958_s17   ;;  %s769_s12 = sshll.u32 %s962_s18, 11 }
  0x24   : > { %p1075_p3 = por %p1224_p0, %p35_p12  ;;  %s735_s13 = sshll.u32 %s173_s11, 7 }
  0x25   : > { %s1084_s24 = scalar_lea.hbm %s1211_s0, %s769_s12  ;;  %s177_s25 = scalar_lea.vmem [#allocation2], %s735_s13 }
  0x26   : > { %s1225_s10 = scalar_select %p1075_p3, 1, 0 }
  0x27   : > { %s184_s26 = sshll.u32 %s177_s25, 4  ;;  %p1086_p11 = pnand %p792_p2, %p37_p13  ;;  %s1090_s26 = int_to_ptr.vmem [resolvable:$true] %s184_s26 }
  0x28   : > { %s1092_s29 = scalar_lea.sflag [#allocation3], %s173_s11  ;;  %s866_s30 = scalar_lea.hbm %s1084_s24, 2048 }
  0x29   : > { %p867_p5 = scmp.ne.s32.totalorder %s1084_s24, %s866_s30  ;;  %p868_p7 = pneg %p1086_p11 }
  0x2a   : > { %s871_s7 = scalar_lea.hbm %s1211_s0, 4096  ;;  %p872_p10 = scmp.lt.s32.totalorder %s1084_s24, %s1211_s0 }
  0x2b   : > { %p869_p9 = pnand %p868_p7, %p867_p5  ;;  %p873_p2 = scmp.lt.s32.totalorder %s871_s7, %s866_s30 }
  0x2d   : > { %p870_p12 = pneg %p869_p9  ;;  %p874_p13 = por %p873_p2, %p872_p10 }
  0x2f   : > { %p875_p0 = pnand %p874_p13, %p870_p12 }
  0x31   : > { %878 = shalt.err (!%p875_p0)
}
  0x32   : > { %s879_s11 = scalar_lea.vmem %s1090_s26, 2048  ;;  %s967_s13 = smov [#allocation2]  }
  0x33   : > { %p880_p1 = scmp.ne.s32.totalorder %s1090_s26, %s879_s11  ;;  %s884_s14 = sshll.u32 %s967_s13, 4  ;;  %s885_s14 = int_to_ptr.vmem [resolvable:$false] %s884_s14 }
  0x34   : > { %s886_s20 = scalar_lea.vmem %s885_s14, 4096  ;;  %p887_p9 = scmp.lt.s32.totalorder %s1090_s26, %s885_s14 }
  0x35   : > { %p882_p6 = pnand %p880_p1, %p868_p7  ;;  %p888_p3 = scmp.lt.s32.totalorder %s886_s20, %s879_s11 }
  0x37   : > { %p883_p5 = pneg %p882_p6  ;;  %p889_p4 = por %p888_p3, %p887_p9 }
  0x39   : > { %p890_p8 = pnand %p889_p4, %p883_p5 }
  0x3b   : > { %893 = shalt.err (!%p890_p8)
}
  0x3c   : > { %s968_s25 = smov 256   ;;  %s969_s30 = smov 16  }
  0x3d   : > { %786 = dma.hbm_to_vmem [thread:$0]  (!%p1086_p11), %s1084_s24, 2048, %s1090_s26, %s1092_s29, %s968_s25, %s968_s25, %s969_s30  }
  0x3e   : > { %p1227_p1 = scmp.ne.s32.totalorder %s1222_s23, 0 }
  0x3f   : > { %s1116_s5 = sand.u32 (!%p1227_p1), 1, %s954_s16   ;;  %p1228_p4 = scmp.ne.s32.totalorder (!%p1227_p1), %s1220_s21, 0 }
  0x40   : > { %196 = sbr.rel (%p1227_p1) target bundleno = 742 (0x2e6), region = 36  ;;  %s739_s6 = sshll.u32 (!%p1227_p1), %s1116_s5, 7 }
  0x41   : > { %s199_s7 = scalar_lea.sflag (!%p1227_p1), [#allocation3], %s1116_s5  ;;  %s1120_s8 = scalar_lea.vmem (!%p1227_p1), [#allocation2], %s739_s6 }
  0x45   : > { %937 = dma.done.wait (%p1228_p4), %s199_s7, 2048  }
  0x46   : > { %939 = vsyncadd (%p1228_p4), %s199_s7, 4294965248  ;;  %p1229_p6 = scmp.eq.s32.totalorder %s1021_s19, 0 }
  0x48   : > { %941 = dma.done.wait (%p1229_p6), [#allocation6], 512   ;;  %p1230_p8 = pmov %p1229_p6 }
  0x49   : > { %v970_v0 = vmov 0.0   ;;  %v235_v1 = vld [vmem:[%s1120_s8 + $0x18] sm:$0xff]  ;;  %v234_v3 = vld [vmem:[%s1120_s8 + $0x10] sm:$0xff]  ;;  %v233_v5 = vld [vmem:[%s1120_s8 + $0x8] sm:$0xff]  ;;  %vm236_vm0 = vcmask 130048   ;;  %v971_v61 = vmov 0  }
  0x4a   : > { %943 = vsyncadd (%p1230_p8), [#allocation6], 4294966784  ;;  %304 = vmatprep.mubr.f32.mxu0 %v970_v0  ;;  %385 = vmatprep.mubr.f32.mxu1 %v970_v0  ;;  %v746_v2 = vld [vmem:[%s1120_s8 + $0x38] sm:$0xff]  ;;  %v745_v4 = vld [vmem:[%s1120_s8 + $0x30] sm:$0xff]  ;;  %s741_s28 = sshll.u32 %s1116_s5, 6  ;;  %s770_s29 = sshll.u32 %s1021_s19, 10 }
  0x4b   : > { %268 = vmatprep.subr.mxu0 %v235_v1  ;;  %349 = vmatprep.subr.mxu1 %v746_v2  ;;  %v744_v6 = vld [vmem:[%s1120_s8 + $0x28] sm:$0xff]  ;;  %v232_v7 = vld [vmem:[%s1120_s8] sm:$0xff]  ;;  %v751_v11 = vld [vmem:[%s1120_s8 + $0x58] sm:$0xff]  ;;  %s230_s12 = scalar_lea.vmem [#allocation7], %s741_s28  ;;  %s1166_s19 = scalar_lea.hbm %s1215_s4, %s770_s29 }
  0x4c   : > { %269 = vmatpush1.msra.mxu0 %v234_v3  ;;  %350 = vmatpush1.msra.mxu1 %v745_v4  ;;  %v743_v8 = vld [vmem:[%s1120_s8 + $0x20] sm:$0xff]  ;;  %v312_v10 = vld [vmem:[#allocation5 + $0x8] sm:$0xff]  ;;  %v750_v12 = vld [vmem:[%s1120_s8 + $0x50] sm:$0xff]  ;;  %s648_s11 = sshll.u32 %s230_s12, 4  ;;  %s635_s20 = scalar_lea.sflag [#allocation4], %s1116_s5  ;;  %s1168_s11 = int_to_ptr.vmem [resolvable:$true] %s648_s11 }
  0x4d   : > { %v231_v9 = vld [vmem:[#allocation5] sm:$0xff]  ;;  %270 = vmatprep.subr.mxu0 %v233_v5  ;;  %351 = vmatprep.subr.mxu1 %v744_v6  ;;  %v756_v13 = vld [vmem:[%s1120_s8 + $0x78] sm:$0xff]  ;;  %v755_v14 = vld [vmem:[%s1120_s8 + $0x70] sm:$0xff]  ;;  %s894_s25 = scalar_lea.vmem %s1168_s11, 1024  ;;  %p1231_p11 = scmp.ne.s32.totalorder %s1225_s10, 0 }
  0x4e   : > { %271 = vmatpush1.msra.mxu0 %v232_v7  ;;  %352 = vmatpush1.msra.mxu1 %v743_v8  ;;  %v749_v15 = vld [vmem:[%s1120_s8 + $0x48] sm:$0xff]  ;;  %v748_v16 = vld [vmem:[%s1120_s8 + $0x40] sm:$0xff]  ;;  %v393_v18 = vld [vmem:[#allocation5 + $0x10] sm:$0xff]  ;;  %p895_p3 = scmp.ne.s32.totalorder %s1168_s11, %s894_s25  ;;  %s972_s30 = smov [#allocation7]  }
  0x4f   : > { %742 = vmatmul.mubr.msk.f32.vlgmr.msra.gmra.mxu0 %vm236_vm0, %v231_v9  ;;  %747 = vmatmul.mubr.msk.f32.vlgmr.msra.gmra.mxu1 %vm236_vm0, %v312_v10  ;;  %v754_v17 = vld [vmem:[%s1120_s8 + $0x68] sm:$0xff]  ;;  %v753_v19 = vld [vmem:[%s1120_s8 + $0x60] sm:$0xff]  ;;  %v474_v20 = vld [vmem:[#allocation5 + $0x18] sm:$0xff]  ;;  %s898_s6 = sshll.u32 %s972_s30, 4  ;;  %s899_s6 = int_to_ptr.vmem [resolvable:$false] %s898_s6 }
  0x50   : > { %430 = vmatprep.subr.mxu0 %v751_v11  ;;  %511 = vmatprep.subr.mxu1 %v756_v13  ;;  %v590_v1 = vld [vmem:[%s1213_s2] sm:$0xff]  ;;  %p896_p7 = pnand %p895_p3, %p1231_p11  ;;  %s900_s7 = scalar_lea.vmem %s899_s6, 2048 }
  0x51   : > { %431 = vmatpush1.msra.mxu0 %v750_v12  ;;  %512 = vmatpush1.msra.mxu1 %v755_v14  ;;  %v594_v4 = vld [vmem:[%s1214_s3] sm:$0xff]  ;;  %p901_p10 = scmp.lt.s32.totalorder %s1168_s11, %s899_s6  ;;  %p902_p2 = scmp.lt.s32.totalorder %s900_s7, %s894_s25 }
  0x52   : > { %432 = vmatprep.subr.mxu0 %v749_v15  ;;  %466 = vmatprep.mubr.f32.mxu0 %v970_v0  ;;  %p897_p12 = pneg %p896_p7 }
  0x53   : > { %433 = vmatpush1.msra.mxu0 %v748_v16  ;;  %513 = vmatprep.subr.mxu1 %v754_v17  ;;  %p903_p13 = por %p902_p2, %p901_p10 }
  0x54   : > { %752 = vmatmul.mubr.msk.f32.vlgmr.msra.gmra.mxu0 %vm236_vm0, %v393_v18  ;;  %514 = vmatpush1.msra.mxu1 %v753_v19 }
  0x55   : > { %547 = vmatprep.mubr.f32.mxu1 %v970_v0  ;;  %836 = vset.pattern.permute.xlu1 %v971_v61  ;;  %p904_p0 = pnand %p903_p13, %p897_p12 }
  0x56   : > { %757 = vmatmul.mubr.msk.f32.vlgmr.msra.gmra.mxu1 %vm236_vm0, %v474_v20  ;;  %837 = vset.pattern.permute.xlu0 %v971_v61 }
 0x10f   : > { %v306_v21 = vpop.f32.mrf.mxu0  ;;  %v1150_v22 = vpop.f32.mrf.mxu1 }
 0x110   : > { %v554_v25 = vadd.f32 %v1150_v22, %v306_v21 }
 0x111   : > { %v308_v23 = vpop.f32.mrf.mxu0  ;;  %v389_v24 = vpop.f32.mrf.mxu1 }
 0x112   : > { %v555_v27 = vadd.f32 %v389_v24, %v308_v23 }
 0x114   : > { %v468_v26 = vpop.f32.mrf.mxu0 }
 0x115   : > { %v556_v28 = vadd.f32 %v554_v25, %v468_v26 }
 0x116   : > { %v549_v29 = vpop.f32.mrf.mxu1  ;;  %v470_v30 = vpop.f32.mrf.mxu0 }
 0x117   : > { %v557_v31 = vadd.f32 %v555_v27, %v470_v30  ;;  %v558_v34 = vadd.f32 %v556_v28, %v549_v29 }
 0x118   : > { %v551_v32 = vpop.f32.mrf.mxu1 }
 0x119   : > { %v559_v33 = vadd.f32 %v557_v31, %v551_v32 }
 0x11b   : > { %v560_v35 = vadd.f32 %v559_v33, %v558_v34 }
 0x11d   : > { %561 = vadd.xlane.f32.xlu0 %v560_v35 }
 0x1a6   : > { %v562_v36 = vpop.xlane.xlu0 %561 }
 0x1a7   : > { %v563_v37 = vmul.f32 0.0009765625, %v562_v36 }
 0x1a9   : > { %v564_v38 = vsub.f32 %v306_v21, %v563_v37  ;;  %v565_v39 = vsub.f32 %v308_v23, %v563_v37  ;;  %v568_v40 = vsub.f32 %v1150_v22, %v563_v37  ;;  %v569_v41 = vsub.f32 %v389_v24, %v563_v37 }
 0x1aa   : > { %v574_v42 = vsub.f32 %v468_v26, %v563_v37  ;;  %v575_v43 = vsub.f32 %v470_v30, %v563_v37  ;;  %v580_v44 = vsub.f32 %v549_v29, %v563_v37  ;;  %v581_v45 = vsub.f32 %v551_v32, %v563_v37 }
 0x1ab   : > { %v566_v46 = vmul.f32 %v564_v38, %v564_v38  ;;  %v567_v47 = vmul.f32 %v565_v39, %v565_v39  ;;  %v570_v48 = vmul.f32 %v568_v40, %v568_v40  ;;  %v571_v49 = vmul.f32 %v569_v41, %v569_v41 }
 0x1ac   : > { %v576_v52 = vmul.f32 %v574_v42, %v574_v42  ;;  %v577_v53 = vmul.f32 %v575_v43, %v575_v43  ;;  %v582_v56 = vmul.f32 %v580_v44, %v580_v44  ;;  %v583_v57 = vmul.f32 %v581_v45, %v581_v45 }
 0x1ad   : > { %v572_v50 = vadd.f32 %v570_v48, %v566_v46  ;;  %v573_v51 = vadd.f32 %v571_v49, %v567_v47 }
 0x1af   : > { %v578_v54 = vadd.f32 %v576_v52, %v572_v50  ;;  %v579_v55 = vadd.f32 %v577_v53, %v573_v51 }
 0x1b1   : > { %v584_v58 = vadd.f32 %v582_v56, %v578_v54  ;;  %v585_v59 = vadd.f32 %v583_v57, %v579_v55 }
 0x1b3   : > { %v586_v60 = vadd.f32 %v585_v59, %v584_v58 }
 0x1b5   : > { %587 = vadd.xlane.f32.xlu0 %v586_v60 }
 0x23e   : > { %v588_v62 = vpop.xlane.xlu0 %587 }
 0x23f   : > { %v589_v63 = vmul.f32 0.0009765625, %v588_v62 }
 0x241   : > { %v591_v0 = vadd.f32 1e-05, %v589_v63 }
 0x243   : > { %838 = vrsqrt.f32 %v591_v0 }
 0x250   : > { %v839_v2 = vpop.eup %838 }
 0x251   : > { %v593_v3 = vmul.f32 %v839_v2, %v590_v1 }
 0x253   : > { %599 = vperm.xlu1 %836, %v593_v3   ;;  %v595_v5 = vmul.f32 %v593_v3, %v563_v37 }
 0x255   : > { %v596_v6 = vsub.f32 %v594_v4, %v595_v5 }
 0x257   : > { %606 = vperm.xlu1 %836, %v596_v6  }
 0x2ce   : > { %v600_v7 = vpop.permute.xlu1 %599 }
 0x2cf   : > { %v602_v8 = vmul.f32 %v600_v7, %v306_v21  ;;  %v603_v9 = vmul.f32 %v600_v7, %v308_v23  ;;  %v613_v10 = vmul.f32 %v600_v7, %v1150_v22  ;;  %v614_v11 = vmul.f32 %v600_v7, %v389_v24 }
 0x2d0   : > { %v620_v12 = vmul.f32 %v600_v7, %v468_v26  ;;  %v621_v13 = vmul.f32 %v600_v7, %v470_v30  ;;  %v627_v14 = vmul.f32 %v600_v7, %v549_v29  ;;  %v628_v15 = vmul.f32 %v600_v7, %v551_v32 }
 0x2d2   : > { %v607_v16 = vpop.permute.xlu1 %606 }
 0x2d3   : > { %v609_v17 = vadd.f32 %v607_v16, %v602_v8  ;;  %v610_v18 = vadd.f32 %v607_v16, %v603_v9  ;;  %v615_v19 = vadd.f32 %v613_v10, %v607_v16  ;;  %v616_v20 = vadd.f32 %v614_v11, %v607_v16 }
 0x2d4   : > { %v622_v21 = vadd.f32 %v620_v12, %v607_v16  ;;  %v623_v22 = vadd.f32 %v621_v13, %v607_v16  ;;  %v629_v23 = vadd.f32 %v627_v14, %v607_v16  ;;  %v630_v24 = vadd.f32 %v628_v15, %v607_v16 }
 0x2d5   : > { %611 = vst [vmem:[%s230_s12] sm:$0xff] %v609_v17  ;;  %612 = vst [vmem:[%s230_s12 + $0x8] sm:$0xff] %v610_v18 }
 0x2d6   : > { %758 = vst [vmem:[%s230_s12 + $0x10] sm:$0xff] %v615_v19  ;;  %759 = vst [vmem:[%s230_s12 + $0x18] sm:$0xff] %v616_v20 }
 0x2d7   : > { %760 = vst [vmem:[%s230_s12 + $0x20] sm:$0xff] %v622_v21  ;;  %761 = vst [vmem:[%s230_s12 + $0x28] sm:$0xff] %v623_v22 }
 0x2d8   : > { %762 = vst [vmem:[%s230_s12 + $0x30] sm:$0xff] %v629_v23  ;;  %763 = vst [vmem:[%s230_s12 + $0x38] sm:$0xff] %v630_v24 }
 0x2d9   : > { %907 = shalt.err (!%p904_p0)
}
 0x2da   : > { %s908_s8 = scalar_lea.hbm %s1166_s19, 1024  ;;  %s912_s24 = scalar_lea.hbm %s1215_s4, 2048 }
 0x2db   : > { %p909_p5 = scmp.ne.s32.totalorder %s1166_s19, %s908_s8  ;;  %p913_p4 = scmp.lt.s32.totalorder %s1166_s19, %s1215_s4 }
 0x2dc   : > { %p914_p6 = scmp.lt.s32.totalorder %s912_s24, %s908_s8 }
 0x2dd   : > { %p910_p9 = pnand %p909_p5, %p1231_p11 }
 0x2de   : > { %p915_p8 = por %p914_p6, %p913_p4 }
 0x2df   : > { %p911_p1 = pneg %p910_p9 }
 0x2e1   : > { %p916_p3 = pnand %p915_p8, %p911_p1 }
 0x2e3   : > { %919 = shalt.err (!%p916_p3)
}
 0x2e4   : > { %s973_s29 = smov 256   ;;  %s974_s12 = smov 16  }
 0x2e5   : > { %777 = dma.vmem_to_hbm [thread:$0]  (%p1231_p11), %s1168_s11, 1024, %s1166_s19, %s635_s20, %s973_s29, %s973_s29, %s974_s12  }
 0x2e6 PF: > { %s663_s13 = sand.u32 1, %s950_s15   ;;  %p1232_p7 = scmp.ne.s32.totalorder %s1221_s22, 0 }
 0x2e7   : > { %p1233_p12 = scmp.ge.s32.totalorder %s962_s18, 2  ;;  %s664_s14 = scalar_lea.sflag [#allocation4], %s663_s13 }
 0x2e9   : > { %p788_p10 = pnand %p1233_p12, %p1232_p7 }
 0x2eb   : > { %p789_p2 = pneg %p788_p10 }
 0x2ed   : > { %945 = dma.done.wait (%p789_p2), %s664_s14, 1024  }
 0x2ee   : > { %947 = vsyncadd (%p789_p2), %s664_s14, 4294966272  ;;  %p18_p13 = scmp.ge.s32.totalorder %s1054_s27, 4   ;;  %s1234_s15 = smov %s954_s16 }
 0x2ef   : > { %s1235_s16 = smov %s958_s17  ;;  %s1236_s17 = smov %s1071_s9 }
 0x2f0   : > { %s1237_s18 = smov %s1054_s27  ;;  %20 = sbr.rel (!%p18_p13) target bundleno = 6 (0x6), region = 94 }
 0x2f5   :  { %669 = vsyncpa [#allocation3], 1 }
 0x2f6   :  { %671 = vsyncpa [#allocation3 + $0x1], 1 }
 0x2f7   :  { %672 = vsyncpa [#allocation6], 1 }
 0x2f8   :  { %673 = vsyncpa [#allocation4], 1 }
 0x2f9   :  { %675 = vsyncpa [#allocation4 + $0x1], 1 }

</bundles_post_ra>
